<compile_context>
chip_gen: v7x
topology: tpu7x:2x2x1
jax: 0.10.0
libtpu: 0.0.40
codegen_flags: <defaults>
</compile_context>

<pallas_src>
import numpy as np
import jax
import jax.numpy as jnp
from jax.experimental import pallas as pl
from jax.experimental.pallas import tpu as pltpu

_LN10 = float(np.log(10.0))
_LANE = 128
_SUBLANE = 8
_TILE_B_MAX = 2048


def _round_up(x: int, m: int) -> int:
    return ((x + m - 1) // m) * m


# ----------------------------------------------------------------------------
# Parameter / buffer construction (glue, plain numpy — mirrors _create_t_age)
# ----------------------------------------------------------------------------
def create_t_age(tau_edges: np.ndarray, n_sub: int) -> np.ndarray:
    """Port of AnalyticSFH._create_t_age (numpy)."""
    if n_sub == 1:
        return tau_edges.astype(np.float32)
    n_age = tau_edges.shape[0]
    log_tau_edges = np.log10(tau_edges)
    t_age = np.zeros(n_age + (n_sub - 1) * (n_age - 1), dtype=np.float32)
    for i_age in range(n_age - 1):
        lower = log_tau_edges[i_age]
        upper = log_tau_edges[i_age + 1]
        # torch.logspace(lower, upper, n_sub + 1)[:-1]
        t_age[i_age * n_sub:(i_age + 1) * n_sub] = np.logspace(lower, upper, n_sub + 1)[:-1]
    t_age[-1] = tau_edges[-1]
    return t_age


def make_fused_trapz_groupsum_matrix_T(t_age: np.ndarray, n_sub: int,
                                       n_pad8: int, k_pad: int) -> np.ndarray:
    """W_T such that (W_T @ y_T)[j, b] == sum(simple_trapz(y, t_age).reshape(B,-1,n_sub), -1)[b, j].

    simple_trapz: sfh[:, i] = 0.5*(t[i+1]-t[i])*(y[:,i]+y[:,i+1])
    group-sum:    out[:, j] = sum_{i in bin j} sfh[:, i]
    => W_T[j, k] = sum over intervals i of bin j with k in {i, i+1} of 0.5*dt[i].

    Padded rows (j >= n_bins) and padded columns (k >= N_t) MUST be exactly zero:
    padded-K entries of y_T are exp(0) = 1 and rely on these zeros to stay inert.
    """
    n_t = t_age.shape[0]
    n_intervals = n_t - 1
    n_bins = n_intervals // n_sub
    W_T = np.zeros((n_pad8, k_pad), dtype=np.float32)
    dt = t_age[1:] - t_age[:-1]
    for i in range(n_intervals):
        j = i // n_sub
        w = 0.5 * dt[i]
        W_T[j, i] += w
        W_T[j, i + 1] += w
    assert np.all(W_T[n_bins:, :] == 0.0), "padded output rows of W_T must stay zero"
    assert np.all(W_T[:, n_t:] == 0.0), "padded contraction cols of W_T must stay zero"
    return W_T


# ----------------------------------------------------------------------------
# Pallas kernel: derive_sfh (exp SFR) fused with trapz + n_sub group-sum
# ----------------------------------------------------------------------------
def analytic_sfh_kernel(t_age_ref, params_ref, wt_ref, out_ref):
    log_tau = params_ref[...]                              # (1, TILE_B), lane-major
    inv_tau = jnp.exp(jnp.float32(-_LN10) * log_tau)       # 10**(-log_tau), EUP
    # derive_sfh (transposed): y_T[k, b] = exp(-t_age[k] * inv_tau[b])
    #   (k_pad, 1) * (1, TILE_B) -> (k_pad, TILE_B); exps on the EUP slot.
    y_t = jnp.exp(-t_age_ref[...] * inv_tau)
    # fused trapezoid + group-sum as one small MXU matmul with precomputed W_T
    out_ref[...] = jnp.dot(wt_ref[...], y_t, preferred_element_type=jnp.float32)


def analytic_sfh_forward(params: jnp.ndarray, t_age: jnp.ndarray, n_sub: int) -> jnp.ndarray:
    """params (B, 1) float32, t_age (N_t,) float32 -> (B, (N_t-1)//n_sub) float32."""
    B = params.shape[0]
    n_t = int(t_age.shape[0])
    n_intervals = n_t - 1
    assert n_intervals % n_sub == 0
    n_bins = n_intervals // n_sub

    # Transposed layout: K (t_age samples) on sublanes -> pad to multiple of 8 only;
    # output age bins on sublanes -> pad to multiple of 8; batch on lanes.
    k_pad = _round_up(n_t, _SUBLANE)
    n_pad8 = _round_up(n_bins, _SUBLANE)

    t_age_np = np.zeros((k_pad, 1), dtype=np.float32)      # padded K rows are 0
    t_age_np[:n_t, 0] = np.asarray(t_age, dtype=np.float32)
    W_T_np = make_fused_trapz_groupsum_matrix_T(np.asarray(t_age, dtype=np.float32),
                                                n_sub, n_pad8, k_pad)
    t_age_col = jnp.asarray(t_age_np)                      # (k_pad, 1)
    W_T = jnp.asarray(W_T_np)                              # (n_pad8, k_pad)

    # Batch on lanes: pad to a multiple of 128; cap the tile so padding waste is at
    # most one tile while still amortizing per-grid-step overhead.
    b_pad128 = _round_up(B, _LANE)
    tile_b = min(_TILE_B_MAX, b_pad128)
    b_pad = _round_up(b_pad128, tile_b)

    log_tau_row = params[:, 0].astype(jnp.float32)[None, :]          # (1, B) lane-major
    if b_pad != B:
        # Padded batch lanes get log_tau = 0 -> inv_tau = 1 -> exp(-t_age) underflows
        # to 0 for large t_age; harmless finite values, sliced off below.
        log_tau_row = jnp.pad(log_tau_row, ((0, 0), (0, b_pad - B)))

    grid = (b_pad // tile_b,)

    cost = pl.CostEstimate(
        flops=2 * b_pad * k_pad * n_pad8,
        transcendentals=b_pad * (k_pad + 1),
        bytes_accessed=4 * (b_pad + k_pad + k_pad * n_pad8 + n_pad8 * b_pad),
    )

    out_t_pad = pl.pallas_call(
        analytic_sfh_kernel,
        out_shape=jax.ShapeDtypeStruct((n_pad8, b_pad), jnp.float32),
        grid_spec=pltpu.PrefetchScalarGridSpec(
            num_scalar_prefetch=0,
            grid=grid,
            in_specs=[
                pl.BlockSpec((k_pad, 1), lambda i: (0, 0)),        # t_age column (grid-invariant)
                pl.BlockSpec((1, tile_b), lambda i: (0, i)),       # log_tau row tile (lane-dense)
                pl.BlockSpec((n_pad8, k_pad), lambda i: (0, 0)),   # fused W^T (grid-invariant)
            ],
            out_specs=pl.BlockSpec((n_pad8, tile_b), lambda i: (0, i)),
        ),
        compiler_params=pltpu.CompilerParams(
            dimension_semantics=("parallel",),
        ),
        cost_estimate=cost,
    )(t_age_col, log_tau_row, W_T)

    # Drop padded age-bin rows / batch lanes, transpose back to (B, n_bins).
    return out_t_pad[:n_bins, :B].T


# ----------------------------------------------------------------------------
# Plain-JAX reference (literal port of the torch forward) for verification
# ----------------------------------------------------------------------------
def analytic_sfh_reference(params, t_age, n_sub):
    t_age2 = t_age[None, :]                                   # unsqueeze(0)
    tau = 10.0 ** params[:, :1]
    y = jnp.exp(-t_age2 / tau)                                # derive_sfh
    sfh = 0.5 * (t_age2[:, 1:] - t_age2[:, :-1]) * (y[:, 1:] + y[:, :-1])
    if n_sub == 1:
        return sfh
    return jnp.sum(sfh.reshape(sfh.shape[0], -1, n_sub), axis=-1)


if __name__ == "__main__":
    n_sub = 4
    n_age = 9                       # number of tau_edges -> 8 output age bins
    B = 2                           # batch of parameter vectors

    # Synthetic SSP-library age-bin edges (years), log-spaced like real libraries.
    tau_edges = np.logspace(5.5, 10.14, n_age).astype(np.float32)
    t_age_np = create_t_age(tau_edges, n_sub)                 # (33,)
    t_age = jnp.asarray(t_age_np)

    # Deterministic example params: log10(tau) in [8, 10].
    key = jax.random.PRNGKey(0)
    params = jax.random.uniform(key, (B, 1), dtype=jnp.float32, minval=8.0, maxval=10.0)

    out = analytic_sfh_forward(params, t_age, n_sub)
    out = jax.block_until_ready(out)

    ref = analytic_sfh_reference(params, t_age, n_sub)
    np.testing.assert_allclose(np.asarray(out), np.asarray(ref), rtol=1e-4, atol=1e-6)

    assert out.shape == (B, n_age - 1) and out.dtype == jnp.float32
    print("KERNEL_OK")
</pallas_src>

<mosaic_0001>
module attributes {stable_mosaic.version = 11 : i64} {
  func.func @analytic_sfh_kernel(%arg0: i32, %arg1: memref<40x1xf32, #tpu.memory_space<vmem>>, %arg2: memref<1x128xf32, #tpu.memory_space<vmem>>, %arg3: memref<8x40xf32, #tpu.memory_space<vmem>>, %arg4: memref<8x128xf32, #tpu.memory_space<vmem>>) attributes {dimension_semantics = [#tpu.dimension_semantics<parallel>], iteration_bounds = array<i64: 1>, scalar_prefetch = 0 : i64, scratch_operands = 0 : i64, tpu.core_type = #tpu.core_type<tc>, window_params = [{pipeline_mode = #tpu.pipeline_mode<synchronous>, transform_indices = @transform_0, window_bounds = array<i64: 40, 1>}, {transform_indices = @transform_1, window_bounds = array<i64: 1, 128>}, {pipeline_mode = #tpu.pipeline_mode<synchronous>, transform_indices = @transform_2, window_bounds = array<i64: 8, 40>}, {transform_indices = @transform_3, window_bounds = array<i64: 8, 128>}]} {
    %c0 = arith.constant 0 : index
    %c0_0 = arith.constant 0 : index
    %0 = vector.load %arg2[%c0, %c0_0] : memref<1x128xf32, #tpu.memory_space<vmem>>, vector<1x128xf32>
    %cst = arith.constant -2.30258512 : f32
    %1 = vector.broadcast %cst : f32 to vector<1x128xf32>
    %2 = arith.mulf %1, %0 : vector<1x128xf32>
    %3 = math.exp %2 : vector<1x128xf32>
    %c0_1 = arith.constant 0 : index
    %c0_2 = arith.constant 0 : index
    %4 = vector.load %arg1[%c0_1, %c0_2] : memref<40x1xf32, #tpu.memory_space<vmem>>, vector<40x1xf32>
    %cst_3 = arith.constant 0.000000e+00 : f32
    %5 = vector.broadcast %cst_3 : f32 to vector<40x1xf32>
    %6 = arith.subf %5, %4 : vector<40x1xf32>
    %7 = vector.broadcast %6 : vector<40x1xf32> to vector<40x128xf32>
    %8 = vector.broadcast %3 : vector<1x128xf32> to vector<40x128xf32>
    %9 = arith.mulf %7, %8 : vector<40x128xf32>
    %10 = math.exp %9 : vector<40x128xf32>
    %c0_4 = arith.constant 0 : index
    %c0_5 = arith.constant 0 : index
    %11 = vector.load %arg3[%c0_4, %c0_5] : memref<8x40xf32, #tpu.memory_space<vmem>>, vector<8x40xf32>
    %cst_6 = arith.constant dense<0.000000e+00> : vector<8x128xf32>
    %12 = tpu.matmul %11, %10, %cst_6 {dimension_numbers = #tpu.dot_dimension_numbers<[1], [0], [0], [1], [0, 0, 1, 1], [], []>} : vector<8x40xf32>, vector<40x128xf32>, vector<8x128xf32> -> vector<8x128xf32>
    %c0_7 = arith.constant 0 : index
    %c0_8 = arith.constant 0 : index
    %13 = vector.load %arg4[%c0_7, %c0_8] : memref<8x128xf32, #tpu.memory_space<vmem>>, vector<8x128xf32>
    tpu.vector_store %arg4[%c0_7, %c0_8], %12 {strides = array<i32>} : memref<8x128xf32, #tpu.memory_space<vmem>>, vector<8x128xf32>,
    return
  }
  func.func @transform_0(%arg0: i32) -> (i32, i32) {
    %c0_i32 = arith.constant 0 : i32
    %c0_i32_0 = arith.constant 0 : i32
    %c0_i32_1 = arith.constant 0 : i32
    return %c0_i32, %c0_i32_0 : i32, i32
  }
  func.func @transform_1(%arg0: i32) -> (i32, i32) {
    %c0_i32 = arith.constant 0 : i32
    %c0_i32_0 = arith.constant 0 : i32
    return %c0_i32, %arg0 : i32, i32
  }
  func.func @transform_2(%arg0: i32) -> (i32, i32) {
    %c0_i32 = arith.constant 0 : i32
    %c0_i32_0 = arith.constant 0 : i32
    %c0_i32_1 = arith.constant 0 : i32
    return %c0_i32, %c0_i32_0 : i32, i32
  }
  func.func @transform_3(%arg0: i32) -> (i32, i32) {
    %c0_i32 = arith.constant 0 : i32
    %c0_i32_0 = arith.constant 0 : i32
    return %c0_i32, %arg0 : i32, i32
  }
}

</mosaic_0001>

<bundles_post_ra>
// kernel: tpu_custom_call.1
= control target key start
LH: loop header
LB: loop body
LE: loop exit
PB: predicated region body
PF: predicated region fallthrough
CT: control target
= control target key end

     0   :  { %v234_v3 = vmov 0   ;;  %s292_s0 = inlined_call_operand.vmem [shape: f32[40,1], index: 0, kind: input, shape index: {}]   ;;  %s293_s1 = inlined_call_operand.vmem [shape: f32[1,128], index: 1, kind: input, shape index: {}]   ;;  %s294_s2 = inlined_call_operand.vmem [shape: f32[8,40], index: 2, kind: input, shape index: {}]   ;;  %s295_s3 = inlined_call_operand.hbm [shape: f32[8,128], index: 3, kind: output, shape index: {}]  }
   0x1   :  { %v21_v0 = vld [vmem:[%s292_s0 + $0x10] sm:$0xff]  ;;  %v19_v1 = vld [vmem:[%s292_s0] sm:$0xff]  ;;  %v22_v2 = vld [vmem:[%s292_s0 + $0x18] sm:$0xff]  ;;  %197 = vset.pattern.permute.xlu1 %v234_v3  ;;  %196 = vset.pattern.permute.xlu0 %v234_v3 }
   0x2   :  { %v26_v4 = vsub.f32 0.0, %v21_v0  ;;  %v24_v5 = vsub.f32 0.0, %v19_v1  ;;  %v20_v6 = vld [vmem:[%s292_s0 + $0x8] sm:$0xff]  ;;  %v27_v7 = vsub.f32 0.0, %v22_v2 }
   0x3   :  { %v25_v8 = vsub.f32 0.0, %v20_v6 }
   0x4   :  { %41 = vperm.xlu1 %197, %v26_v4   ;;  %31 = vperm.xlu0 %196, %v24_v5  }
   0x5   :  { %8 = vsyncpa [#allocation3], 0  ;;  %v23_v9 = vld [vmem:[%s292_s0 + $0x20] sm:$0xff]  ;;  %v235_v11 = vmov 0.0|0.0   ;;  %vm236_vm0 = vmmov 0   ;;  %v237_v12 = vmov 0.0   ;;  %v55_v16 = vlaneseq }
   0x6   :  { %v28_v10 = vsub.f32 0.0, %v23_v9  ;;  %185 = vmatprep.subr.bf16.mxu0 %v235_v11  ;;  %182 = vmatprep.mubr.msk.f32.mxu0 %vm236_vm0, %v237_v12  ;;  %v15_v13 = vld [vmem:[%s293_s1] sm:$0x1]  ;;  %vm76_vm1 = vcmask 326656   ;;  %s238_s24 = smov [#allocation2]  }
   0x7   :  { %v16_v14 = vmul.f32 -2.3025851, %v15_v13  ;;  %v56_v17 = vshrl.u32 %v55_v16, 7  ;;  %v75_v42 = vld [vmem:[%s294_s2] sm:$0xff]  ;;  %s157_s25 = sshll.u32 %s238_s24, 4  ;;  %s158_s25 = int_to_ptr.vmem [resolvable:$true] %s157_s25 }
   0x8   :  { %46 = vperm.xlu1 %197, %v27_v7   ;;  %36 = vperm.xlu0 %196, %v25_v8   ;;  %s210_s26 = scalar_lea.vmem %s158_s25, 128  ;;  %p215_p1 = scmp.lt.s32.totalorder %s158_s25, %s158_s25 }
   0x9   :  { %v17_v15 = vmul.f32 1.442695, %v16_v14  ;;  %v57_v18 = vsub.s32 0, %v56_v17  ;;  %p211_p0 = scmp.ne.s32.totalorder %s158_s25, %s210_s26  ;;  %p216_p2 = scmp.lt.s32.totalorder %s210_s26, %s210_s26 }
   0xb   :  { %198 = vpow2.f32 %v17_v15  ;;  %p217_p3 = por %p216_p2, %p215_p1 }
   0xc   :  { %51 = vperm.xlu0 %196, %v28_v10  }
   0xd   :  { %p218_p4 = pnand %p217_p3, %p211_p0 }
  0x15   :  { %v199_v19 = vpop.eup %198 }
  0x16   :  { %v58_v20 = vrot.slane %v199_v19, %v57_v18 }
  0x83   :  { %v42_v21 = vpop.permute.xlu1 %41  ;;  %v32_v22 = vpop.permute.xlu0 %31 }
  0x84   :  { %v60_v23 = vmul.f32 %v58_v20, %v32_v22  ;;  %v62_v24 = vmul.f32 %v58_v20, %v42_v21 }
  0x86   :  { %v65_v27 = vmul.f32 1.442695, %v60_v23  ;;  %v69_v30 = vmul.f32 1.442695, %v62_v24 }
  0x87   :  { %v47_v25 = vpop.permute.xlu1 %46  ;;  %v37_v26 = vpop.permute.xlu0 %36 }
  0x88   :  { %v63_v28 = vmul.f32 %v58_v20, %v47_v25  ;;  %v61_v29 = vmul.f32 %v58_v20, %v37_v26  ;;  %200 = vpow2.f32 %v65_v27 }
  0x8a   :  { %v67_v31 = vmul.f32 1.442695, %v61_v29  ;;  %v71_v32 = vmul.f32 1.442695, %v63_v28 }
  0x8b   :  { %v52_v33 = vpop.permute.xlu0 %51 }
  0x8c   :  { %202 = vpow2.f32 %v67_v31  ;;  %v64_v34 = vmul.f32 %v58_v20, %v52_v33 }
  0x8d   :  { %204 = vpow2.f32 %v69_v30 }
  0x8e   :  { %206 = vpow2.f32 %v71_v32  ;;  %v73_v35 = vmul.f32 1.442695, %v64_v34 }
  0x90   :  { %208 = vpow2.f32 %v73_v35 }
  0x92   :  { %v201_v36 = vpop.eup %200 }
  0x96   :  { %v203_v37 = vpop.eup %202 }
  0x97   :  { %v205_v38 = vpop.eup %204  ;;  %v186_v39 = vpack.c.bf16 %v203_v37, %v201_v36 }
  0x98   :  { %v207_v40 = vpop.eup %206 }
  0x99   :  { %187 = vmatpush3.bf16.msra.mxu0 %v186_v39  ;;  %v189_v41 = vpack.c.bf16 %v207_v40, %v205_v38 }
  0x9a   :  { %188 = vmatprep.subr.bf16.mxu0 %v235_v11  ;;  %v209_v43 = vpop.eup %208 }
  0x9d   :  { %190 = vmatpush3.bf16.msra.mxu0 %v189_v41 }
  0x9e   :  { %180 = vmatprep.subr.mxu0 %v237_v12 }
  0xa1   :  { %181 = vmatpush3.msra.mxu0 %v209_v43 }
  0xa2   :  { %183 = vmatmul.mubr.msk.f32.vlgmr.msra.gmra.mrb[0].mxu0 %vm76_vm1, %v75_v42 }
 0x175   :  { %v146_v44 = vpop.f32.mrb[0].mxu0 }
 0x176   :  { %150 = vst [vmem:[#allocation2] sm:$0xff] %v146_v44  ;;  %v184_v45 = vpop.f32.mrb[1].mxu0 }
 0x177   :  { %221 = shalt.err (!%p218_p4)
}
 0x178   :  { %s222_s2 = scalar_lea.hbm %s295_s3, 128 }
 0x179   :  { %p223_p5 = scmp.ne.s32.totalorder %s295_s3, %s222_s2  ;;  %p226_p6 = scmp.lt.u32.totalorder %s222_s2, %s295_s3 }
 0x17b   :  { %p228_p7 = pnand %p226_p6, %p223_p5 }
 0x17d   :  { %231 = shalt.err (!%p228_p7)
}
 0x17e   :  { %160 = dma.vmem_to_hbm [thread:$0]  %s158_s25, 128, %s295_s3, [#allocation3]  }
 0x17f   :  { %232 = dma.done.wait [#allocation3], 128  }
 0x180   :  { %233 = vsyncadd [#allocation3], 4294967168 }
 0x181   :  { %164 = vsyncpa [#allocation3], 1 }

</bundles_post_ra>
